<compile_context>
chip_gen: v6e
topology: v6e:2x2x1
jax: 0.10.0
libtpu: 0.0.40
codegen_flags: <defaults>
</compile_context>

<pallas_src>
import jax
import jax.numpy as jnp
import numpy as np
from jax import lax
from jax.experimental import pallas as pl
from jax.experimental.pallas import tpu as pltpu

_VMEM_LIMIT = 48 * 1024 * 1024   # explicit scoped-VMEM budget (< v7x's 64 MiB)


def _pick_tile(n, target, mult=128):
    """Largest multiple of `mult` that divides n and is <= target, else n."""
    t = min(target, n)
    if t == n:
        return n
    best = 0
    for cand in range(mult, t + 1, mult):
        if n % cand == 0:
            best = cand
    return best if best else n


def _proj_kernel(x_ref, wk_ref, bk_ref, wv_ref, bv_ref, kq_ref, v_ref):
    """1x1-conv projections for one (batch, spatial-tile) block.

    x_ref : (Cin, Tp)  -- lane-dense input tile (HW on the lane axis).
    kq_ref: (Tp, Ck)   -- shared key/query activations (BN + bias + scale folded).
    v_ref : (Tp, Cv)
    """
    x = x_ref[...]
    # Contract Cin (dim 0 of both operands) without materializing a transpose.
    kq = lax.dot_general(x, wk_ref[...], (((0,), (0,)), ((), ())),
                         preferred_element_type=jnp.float32)        # (Tp, Ck)
    kq = jnp.maximum(kq + bk_ref[...], 0.0)                         # ReLU
    v = lax.dot_general(x, wv_ref[...], (((0,), (0,)), ((), ())),
                        preferred_element_type=jnp.float32)         # (Tp, Cv)
    v = v + bv_ref[...]
    kq_ref[...] = kq.astype(kq_ref.dtype)
    v_ref[...] = v.astype(v_ref.dtype)


def _attn_kernel(q_ref, k_ref, v_ref, ww_ref, bw_ref, o_ref,
                 m_sc, l_sc, acc_sc):
    """Online-softmax attention over kv tiles + fused output projection W.

    q_ref: (Tq, Ck)  k_ref: (Tkv, Ck)  v_ref: (Tkv, Cv)   (bf16 operands)
    o_ref: (Cout, Tq) -- lane-dense block of the (B, Cout, HW) output.
    """
    ki = pl.program_id(2)

    @pl.when(ki == 0)
    def _init():
        m_sc[...] = jnp.full(m_sc.shape, -jnp.inf, m_sc.dtype)
        l_sc[...] = jnp.zeros(l_sc.shape, l_sc.dtype)
        acc_sc[...] = jnp.zeros(acc_sc.shape, acc_sc.dtype)

    # NT matmul: contract the channel (last) dims of q and k directly on the
    # MXU; the key_channels**-0.5 scale is already folded into the weights.
    s = lax.dot_general(q_ref[...], k_ref[...], (((1,), (1,)), ((), ())),
                        preferred_element_type=jnp.float32)         # (Tq, Tkv)

    m_prev = m_sc[...]
    m_new = jnp.maximum(m_prev, jnp.max(s, axis=-1, keepdims=True))
    alpha = jnp.exp(m_prev - m_new)
    p = jnp.exp(s - m_new)                                          # (Tq, Tkv)
    l_sc[...] = alpha * l_sc[...] + jnp.sum(p, axis=-1, keepdims=True)
    acc_sc[...] = alpha * acc_sc[...] + jnp.dot(
        p.astype(v_ref.dtype), v_ref[...], preferred_element_type=jnp.float32)
    m_sc[...] = m_new

    @pl.when(ki == pl.num_programs(2) - 1)
    def _finalize():
        # Deferred softmax normalization on the small (Tq, Cv) context only.
        ctx = acc_sc[...] * pl.reciprocal(l_sc[...], approx=True)   # (Tq, Cv)
        # Fused 1x1 conv W, emitted transposed -> (Cout, Tq): contraction over
        # Cv without materializing ctx^T; keeps HW on the lane axis for a
        # dense, unmasked store and removes any wrapper transpose.
        out = lax.dot_general(ww_ref[...], ctx, (((0,), (1,)), ((), ())),
                              preferred_element_type=jnp.float32)   # (Cout, Tq)
        o_ref[...] = (out + bw_ref[...]).astype(o_ref.dtype)


def base_oc_forward(x_nchw, params, *, q_tile=256, kv_tile=512, proj_tile=512,
                    compute_dtype=jnp.bfloat16):
    """x_nchw: (B, Cin, H, W) float32. Returns (B, Cout, H, W) float32."""
    B, Cin, H, W = x_nchw.shape
    HW = H * W
    wk, bk, bn_s, bn_b, wv, bv, ww, bw = params
    Ck, Cv, Cout = wk.shape[1], wv.shape[1], ww.shape[1]

    # Fold conv bias + BN affine + key_channels**-0.5 into the shared
    # key/query projection.  relu(c*z) = c*relu(z) for c > 0, so the fold is exact.
    c = float(Ck) ** -0.25
    wk_f = (wk * bn_s) * c                       # (Cin, Ck)
    bk_f = (bk * bn_s + bn_b) * c                # (1, Ck)
    bw_col = bw.reshape(Cout, 1)                 # bias for the (Cout, Tq) layout

    x = x_nchw.reshape(B, Cin, HW)               # lane-dense input, no transpose

    Tp = _pick_tile(HW, proj_tile)
    Tq = _pick_tile(HW, q_tile)
    Tkv = _pick_tile(HW, kv_tile)

    # ---- pass 1: shared key/query + value projections (computed once) ----
    kq, v = pl.pallas_call(
        _proj_kernel,
        out_shape=(jax.ShapeDtypeStruct((B, HW, Ck), compute_dtype),
                   jax.ShapeDtypeStruct((B, HW, Cv), compute_dtype)),
        grid_spec=pltpu.PrefetchScalarGridSpec(
            num_scalar_prefetch=0,
            grid=(B, HW // Tp),
            in_specs=[
                pl.BlockSpec((None, Cin, Tp), lambda b, p: (b, 0, p)),  # x
                pl.BlockSpec((Cin, Ck), lambda b, p: (0, 0)),           # wk folded
                pl.BlockSpec((1, Ck), lambda b, p: (0, 0)),             # bk folded
                pl.BlockSpec((Cin, Cv), lambda b, p: (0, 0)),           # wv
                pl.BlockSpec((1, Cv), lambda b, p: (0, 0)),             # bv
            ],
            out_specs=(
                pl.BlockSpec((None, Tp, Ck), lambda b, p: (b, p, 0)),   # kq
                pl.BlockSpec((None, Tp, Cv), lambda b, p: (b, p, 0)),   # v
            ),
        ),
        compiler_params=pltpu.CompilerParams(
            dimension_semantics=("parallel", "parallel"),
            vmem_limit_bytes=_VMEM_LIMIT),
    )(x, wk_f, bk_f, wv, bv)

    # ---- pass 2: tiled attention (online softmax) + fused W projection ----
    out = pl.pallas_call(
        _attn_kernel,
        out_shape=jax.ShapeDtypeStruct((B, Cout, HW), jnp.float32),
        grid_spec=pltpu.PrefetchScalarGridSpec(
            num_scalar_prefetch=0,
            grid=(B, HW // Tq, HW // Tkv),
            in_specs=[
                pl.BlockSpec((None, Tq, Ck), lambda b, qi, ki: (b, qi, 0)),   # q
                pl.BlockSpec((None, Tkv, Ck), lambda b, qi, ki: (b, ki, 0)),  # k
                pl.BlockSpec((None, Tkv, Cv), lambda b, qi, ki: (b, ki, 0)),  # v
                pl.BlockSpec((Cv, Cout), lambda b, qi, ki: (0, 0)),           # W
                pl.BlockSpec((Cout, 1), lambda b, qi, ki: (0, 0)),            # W bias
            ],
            out_specs=pl.BlockSpec((None, Cout, Tq),
                                   lambda b, qi, ki: (b, 0, qi)),
            scratch_shapes=[
                pltpu.VMEM((Tq, 1), jnp.float32),    # running max m
                pltpu.VMEM((Tq, 1), jnp.float32),    # running denom l
                pltpu.VMEM((Tq, Cv), jnp.float32),   # unnormalized context acc
            ],
        ),
        compiler_params=pltpu.CompilerParams(
            dimension_semantics=("parallel", "parallel", "arbitrary"),
            vmem_limit_bytes=_VMEM_LIMIT),
    )(kq, kq, v, ww, bw_col)

    return out.reshape(B, Cout, H, W)            # contiguous reshape only


def make_params(key, in_channels, key_channels, value_channels, out_channels,
                zero_W=True):
    """Deterministic params mirroring the module's __init__ shapes.

    1x1 conv weights (Cout, Cin, 1, 1) are stored as (Cin, Cout) matrices.
    BN (eval mode, fresh stats): gamma=1, beta=0, mean=0, var=1, eps=1e-5.
    """
    k1, k2, k3, k4, k5 = jax.random.split(key, 5)
    wk = jax.random.normal(k1, (in_channels, key_channels), jnp.float32) * 0.1
    bk = jax.random.normal(k2, (1, key_channels), jnp.float32) * 0.1
    eps = 1e-5
    gamma = jnp.ones((1, key_channels), jnp.float32)
    beta = jnp.zeros((1, key_channels), jnp.float32)
    bn_scale = gamma / jnp.sqrt(1.0 + eps)       # running_var = 1
    bn_shift = beta                              # running_mean = 0
    wv = jax.random.normal(k3, (in_channels, value_channels), jnp.float32) * 0.1
    bv = jax.random.normal(k4, (1, value_channels), jnp.float32) * 0.1
    if zero_W:   # faithful to nn.init.constant(W.weight, 0); constant(W.bias, 0)
        ww = jnp.zeros((value_channels, out_channels), jnp.float32)
        bw = jnp.zeros((1, out_channels), jnp.float32)
    else:        # non-zero variant used only to exercise the kernel numerics
        ww = jax.random.normal(k5, (value_channels, out_channels), jnp.float32) * 0.1
        bw = jax.random.normal(jax.random.fold_in(k5, 1),
                               (1, out_channels), jnp.float32) * 0.1
    return (wk, bk, bn_scale, bn_shift, wv, bv, ww, bw)


def reference_forward(x_nchw, params):
    """Pure-JAX f32 reference of the same forward (for correctness check)."""
    B, Cin, H, W = x_nchw.shape
    HW = H * W
    wk, bk, bn_s, bn_b, wv, bv, ww, bw = params
    x = jnp.transpose(x_nchw.reshape(B, Cin, HW), (0, 2, 1))
    kq = jnp.maximum((x @ wk + bk) * bn_s + bn_b, 0.0)
    v = x @ wv + bv
    sim = jnp.einsum("bqc,bkc->bqk", kq, kq) * (wk.shape[1] ** -0.5)
    sim = jax.nn.softmax(sim, axis=-1)
    ctx = jnp.einsum("bqk,bkc->bqc", sim, v)
    out = ctx @ ww + bw
    return jnp.transpose(out, (0, 2, 1)).reshape(B, ww.shape[1], H, W)


if __name__ == "__main__":
    B, Cin, H, W = 2, 4, 16, 16
    key_channels, value_channels, out_channels = 8, 8, 4

    x = jax.random.normal(jax.random.PRNGKey(0), (B, Cin, H, W), jnp.float32)

    # Numerics check with non-zero output projection (bf16 MXU operands, f32
    # accumulation), once with small tiles to force multi-tile online softmax
    # and once with the default tile targets.
    params_nz = make_params(jax.random.PRNGKey(1), Cin, key_channels,
                            value_channels, out_channels, zero_W=False)
    want = jax.block_until_ready(reference_forward(x, params_nz))

    got_tiled = jax.block_until_ready(
        base_oc_forward(x, params_nz, q_tile=128, kv_tile=128, proj_tile=128))
    np.testing.assert_allclose(np.asarray(got_tiled), np.asarray(want),
                               rtol=2e-2, atol=1e-3)

    got = jax.block_until_ready(base_oc_forward(x, params_nz))
    np.testing.assert_allclose(np.asarray(got), np.asarray(want),
                               rtol=2e-2, atol=1e-3)

    # Faithful module init (W.weight = W.bias = 0) => output is exactly zero.
    params = make_params(jax.random.PRNGKey(1), Cin, key_channels,
                         value_channels, out_channels, zero_W=True)
    out = jax.block_until_ready(base_oc_forward(x, params))
    assert out.shape == (B, out_channels, H, W)
    assert np.allclose(np.asarray(out), 0.0)

    print("KERNEL_OK")
</pallas_src>

<mosaic_0001>
module attributes {stable_mosaic.version = 11 : i64} {
  func.func @_proj_kernel(%arg0: i32, %arg1: i32, %arg2: memref<1x4x128xf32, #tpu.memory_space<vmem>>, %arg3: memref<4x8xf32, #tpu.memory_space<vmem>>, %arg4: memref<1x8xf32, #tpu.memory_space<vmem>>, %arg5: memref<4x8xf32, #tpu.memory_space<vmem>>, %arg6: memref<1x8xf32, #tpu.memory_space<vmem>>, %arg7: memref<1x128x8xbf16, #tpu.memory_space<vmem>>, %arg8: memref<1x128x8xbf16, #tpu.memory_space<vmem>>) attributes {dimension_semantics = [#tpu.dimension_semantics<parallel>, #tpu.dimension_semantics<parallel>], iteration_bounds = array<i64: 2, 2>, scalar_prefetch = 0 : i64, scratch_operands = 0 : i64, tpu.core_type = #tpu.core_type<tc>, window_params = [{transform_indices = @transform_0, window_bounds = array<i64: 1, 4, 128>}, {pipeline_mode = #tpu.pipeline_mode<synchronous>, transform_indices = @transform_1, window_bounds = array<i64: 4, 8>}, {pipeline_mode = #tpu.pipeline_mode<synchronous>, transform_indices = @transform_2, window_bounds = array<i64: 1, 8>}, {pipeline_mode = #tpu.pipeline_mode<synchronous>, transform_indices = @transform_3, window_bounds = array<i64: 4, 8>}, {pipeline_mode = #tpu.pipeline_mode<synchronous>, transform_indices = @transform_4, window_bounds = array<i64: 1, 8>}, {transform_indices = @transform_5, window_bounds = array<i64: 1, 128, 8>}, {transform_indices = @transform_6, window_bounds = array<i64: 1, 128, 8>}]} {
    %c0 = arith.constant 0 : index
    %c0_0 = arith.constant 0 : index
    %c0_1 = arith.constant 0 : index
    %0 = vector.load %arg2[%c0, %c0_0, %c0_1] : memref<1x4x128xf32, #tpu.memory_space<vmem>>, vector<1x4x128xf32>
    %1 = vector.shape_cast %0 : vector<1x4x128xf32> to vector<4x128xf32>
    %c0_2 = arith.constant 0 : index
    %c0_3 = arith.constant 0 : index
    %2 = vector.load %arg3[%c0_2, %c0_3] : memref<4x8xf32, #tpu.memory_space<vmem>>, vector<4x8xf32>
    %cst = arith.constant dense<0.000000e+00> : vector<128x8xf32>
    %3 = tpu.matmul %1, %2, %cst {dimension_numbers = #tpu.dot_dimension_numbers<[0], [0], [1], [1], [0, 1, 1, 1], [], []>} : vector<4x128xf32>, vector<4x8xf32>, vector<128x8xf32> -> vector<128x8xf32>
    %c0_4 = arith.constant 0 : index
    %c0_5 = arith.constant 0 : index
    %4 = vector.load %arg4[%c0_4, %c0_5] : memref<1x8xf32, #tpu.memory_space<vmem>>, vector<1x8xf32>
    %5 = vector.broadcast %4 : vector<1x8xf32> to vector<128x8xf32>
    %6 = arith.addf %3, %5 : vector<128x8xf32>
    %cst_6 = arith.constant 0.000000e+00 : f32
    %7 = vector.broadcast %cst_6 : f32 to vector<128x8xf32>
    %8 = arith.maximumf %6, %7 : vector<128x8xf32>
    %c0_7 = arith.constant 0 : index
    %c0_8 = arith.constant 0 : index
    %9 = vector.load %arg5[%c0_7, %c0_8] : memref<4x8xf32, #tpu.memory_space<vmem>>, vector<4x8xf32>
    %cst_9 = arith.constant dense<0.000000e+00> : vector<128x8xf32>
    %10 = tpu.matmul %1, %9, %cst_9 {dimension_numbers = #tpu.dot_dimension_numbers<[0], [0], [1], [1], [0, 1, 1, 1], [], []>} : vector<4x128xf32>, vector<4x8xf32>, vector<128x8xf32> -> vector<128x8xf32>
    %c0_10 = arith.constant 0 : index
    %c0_11 = arith.constant 0 : index
    %11 = vector.load %arg6[%c0_10, %c0_11] : memref<1x8xf32, #tpu.memory_space<vmem>>, vector<1x8xf32>
    %12 = vector.broadcast %11 : vector<1x8xf32> to vector<128x8xf32>
    %13 = arith.addf %10, %12 : vector<128x8xf32>
    %14 = arith.truncf %8 : vector<128x8xf32> to vector<128x8xbf16>
    %c0_12 = arith.constant 0 : index
    %c0_13 = arith.constant 0 : index
    %c0_14 = arith.constant 0 : index
    %15 = vector.load %arg7[%c0_12, %c0_13, %c0_14] : memref<1x128x8xbf16, #tpu.memory_space<vmem>>, vector<1x128x8xbf16>
    %16 = vector.shape_cast %15 : vector<1x128x8xbf16> to vector<128x8xbf16>
    %17 = vector.shape_cast %14 : vector<128x8xbf16> to vector<1x128x8xbf16>
    tpu.vector_store %arg7[%c0_12, %c0_13, %c0_14], %17 {strides = array<i32>} : memref<1x128x8xbf16, #tpu.memory_space<vmem>>, vector<1x128x8xbf16>,
    %18 = arith.truncf %13 : vector<128x8xf32> to vector<128x8xbf16>
    %c0_15 = arith.constant 0 : index
    %c0_16 = arith.constant 0 : index
    %c0_17 = arith.constant 0 : index
    %19 = vector.load %arg8[%c0_15, %c0_16, %c0_17] : memref<1x128x8xbf16, #tpu.memory_space<vmem>>, vector<1x128x8xbf16>
    %20 = vector.shape_cast %19 : vector<1x128x8xbf16> to vector<128x8xbf16>
    %21 = vector.shape_cast %18 : vector<128x8xbf16> to vector<1x128x8xbf16>
    tpu.vector_store %arg8[%c0_15, %c0_16, %c0_17], %21 {strides = array<i32>} : memref<1x128x8xbf16, #tpu.memory_space<vmem>>, vector<1x128x8xbf16>,
    return
  }
  func.func @transform_0(%arg0: i32, %arg1: i32) -> (i32, i32, i32) {
    %c0_i32 = arith.constant 0 : i32
    %c0_i32_0 = arith.constant 0 : i32
    return %arg0, %c0_i32, %arg1 : i32, i32, i32
  }
  func.func @transform_1(%arg0: i32, %arg1: i32) -> (i32, i32) {
    %c0_i32 = arith.constant 0 : i32
    %c0_i32_0 = arith.constant 0 : i32
    %c0_i32_1 = arith.constant 0 : i32
    return %c0_i32, %c0_i32_0 : i32, i32
  }
  func.func @transform_2(%arg0: i32, %arg1: i32) -> (i32, i32) {
    %c0_i32 = arith.constant 0 : i32
    %c0_i32_0 = arith.constant 0 : i32
    %c0_i32_1 = arith.constant 0 : i32
    return %c0_i32, %c0_i32_0 : i32, i32
  }
  func.func @transform_3(%arg0: i32, %arg1: i32) -> (i32, i32) {
    %c0_i32 = arith.constant 0 : i32
    %c0_i32_0 = arith.constant 0 : i32
    %c0_i32_1 = arith.constant 0 : i32
    return %c0_i32, %c0_i32_0 : i32, i32
  }
  func.func @transform_4(%arg0: i32, %arg1: i32) -> (i32, i32) {
    %c0_i32 = arith.constant 0 : i32
    %c0_i32_0 = arith.constant 0 : i32
    %c0_i32_1 = arith.constant 0 : i32
    return %c0_i32, %c0_i32_0 : i32, i32
  }
  func.func @transform_5(%arg0: i32, %arg1: i32) -> (i32, i32, i32) {
    %c0_i32 = arith.constant 0 : i32
    %c0_i32_0 = arith.constant 0 : i32
    return %arg0, %arg1, %c0_i32 : i32, i32, i32
  }
  func.func @transform_6(%arg0: i32, %arg1: i32) -> (i32, i32, i32) {
    %c0_i32 = arith.constant 0 : i32
    %c0_i32_0 = arith.constant 0 : i32
    return %arg0, %arg1, %c0_i32 : i32, i32, i32
  }
}

</mosaic_0001>

<bundles_post_ra>
// kernel: tpu_custom_call.1
= control target key start
LH: loop header
LB: loop body
LE: loop exit
PB: predicated region body
PF: predicated region fallthrough
CT: control target
= control target key end

     0   :  { %s1806_s0 = inlined_call_operand.hbm [shape: f32[2,4,256], index: 0, kind: input, shape index: {}]   ;;  %s1807_s1 = inlined_call_operand.hbm [shape: f32[4,8], index: 1, kind: input, shape index: {}]   ;;  %s1808_s2 = inlined_call_operand.vmem [shape: f32[1,8], index: 2, kind: input, shape index: {}]   ;;  %s1809_s3 = inlined_call_operand.vmem [shape: f32[4,8], index: 3, kind: input, shape index: {}]   ;;  %s1810_s4 = inlined_call_operand.vmem [shape: f32[1,8], index: 4, kind: input, shape index: {}]   ;;  %s1811_s5 = inlined_call_operand.vmem [shape: bf16[2,256,8], index: 5, kind: output, shape index: {0}]   ;;  %s1812_s6 = inlined_call_operand.vmem [shape: bf16[2,256,8], index: 6, kind: output, shape index: {1}]  }
   0x1   :  { %1814 = sst [smem:[#allocation9_spill]] %s1807_s1 }
   0x2   :  { %1815 = sst [smem:[#allocation10_spill]] %s1810_s4 }
   0x3   :  { %1816 = sst [smem:[#allocation11_spill]] %s1811_s5 }
   0x4   :  { %1817 = sst [smem:[#allocation12_spill]] %s1812_s6 }
   0x5   :  { %12 = vsyncpa [#allocation3], 0 }
   0x6   :  { %14 = vsyncpa [#allocation3 + $0x1], 0 }
   0x7   :  { %15 = vsyncpa [#allocation5], 0  ;;  %s1513_s21 = smov 0   ;;  %s1515_s22 = smov 0  }
   0x8   :  { %s1517_s23 = smov 0   ;;  %s1519_s24 = smov 0  }
   0x9   :  { %s1521_s25 = smov 0   ;;  %s1523_s26 = smov 0  }
   0xa   :  { %s1525_s27 = smov 0   ;;  %s1527_s28 = smov 0  }
   0xb LB: > { %s1062_s29 = sadd.s32 4294967295, %s1474_s28   ;;  %p55_p0 = scmp.ne.s32.totalorder %s1450_s22, %s1446_s21  ;;  %s1474_s28 = sphi %s1527_s28, %s21_s28   ;;  %s1470_s27 = sphi %s1525_s27, %s1835_s27   ;;  %s1466_s26 = sphi %s1523_s26, %s1834_s26   ;;  %s1462_s25 = sphi %s1521_s25, %s1833_s25   ;;  %s1458_s24 = sphi %s1519_s24, %s1832_s24   ;;  %s1454_s23 = sphi %s1517_s23, %s1831_s23   ;;  %s1450_s22 = sphi %s1515_s22, %s1830_s22   ;;  %s1446_s21 = sphi %s1513_s21, %s1829_s21  }
   0xc   : > { %p1553_p1 = scmp.eq.s32.totalorder %s1062_s29, 0  ;;  %p1064_p2 = scmp.ge.s32.totalorder %s1474_s28, 1 }
   0xd   : > { %p206_p3 = scmp.lt.s32.totalorder %s1474_s28, 5  ;;  %s1476_s9 = smov [#allocation4]  }
   0xe   : > { %p1561_p4 = por %p1553_p1, %p55_p0  ;;  %s219_s10 = sshll.u32 %s1476_s9, 4  ;;  %s220_s10 = int_to_ptr.vmem [resolvable:$true] %s219_s10 }
   0xf   : > { %p1565_p5 = pnand %p1064_p2, %p206_p3  ;;  %s30_s11 = sadd.s32 1, %s1466_s26 }
  0x10   : > { %s1361_s12 = scalar_lea.vmem %s220_s10, 64  ;;  %p1369_p12 = scmp.lt.s32.totalorder %s220_s10, %s220_s10 }
  0x11   : > { %p1273_p6 = pneg %p1565_p5  ;;  %p1362_p9 = scmp.ne.s32.totalorder %s220_s10, %s1361_s12 }
  0x12   : > { %p1370_p13 = scmp.lt.s32.totalorder %s1361_s12, %s1361_s12 }
  0x13   : > { %p1274_p7 = pnand %p1273_p6, %p1553_p1 }
  0x14   : > { %p1371_p0 = por %p1370_p13, %p1369_p12 }
  0x15   : > { %p1352_p8 = pneg %p1274_p7 }
  0x17   : > { %p1364_p10 = pnand %p1362_p9, %p1352_p8 }
  0x19   : > { %p1365_p11 = pneg %p1364_p10 }
  0x1b   : > { %p1372_p2 = pnand %p1371_p0, %p1365_p11 }
  0x1d   : > { %1375 = shalt.err (!%p1372_p2)
}
  0x1e   : > { %s1821_s1 = sld [smem:[#allocation9_spill]]  ;;  %p31_p3 = scmp.ge.s32.totalorder %s30_s11, 2 }
  0x1f   : > { %s33_s15 = sadd.s32 1, %s1470_s27  ;;  %s42_s16 = sadd.s32 1, %s1454_s23 }
  0x20   : > { %s1837_s11 = smov (%p31_p3, %s30_s11), 0  ;;  %s1839_s15 = smov (!%p31_p3, %s33_s15), %s1470_s27 }
  0x21   : > { %1822 = sst [smem:[#allocation8_spill]] %s1837_s11  ;;  %p49_p6 = scmp.ne.s32.totalorder %s1454_s23, %s1450_s22 }
  0x22   : > { %p50_p8 = scmp.eq.s32.totalorder %s1474_s28, 0  ;;  %p35_p9 = scmp.ge.s32.totalorder %s1839_s15, 2 }
  0x23   : > { %s38_s17 = ssub.s32 %s1466_s26, %s1837_s11  ;;  %p1282_p10 = scmp.lt.s32.totalorder %s1474_s28, 4 }
  0x24   : > { %1276 = dma.hbm_to_vmem [thread:$0]  (!%p1274_p7), %s1821_s1, 64, %s220_s10, [#allocation5]  }
  0x25   : > { %s239_s18 = sand.u32 1, %s1454_s23   ;;  %s1841_s15 = smov (%p35_p9, %s1839_s15), 0 }
  0x26   : > { %p1591_p7 = por %p50_p8, %p49_p6  ;;  %s1067_s20 = sshll.u32 %s239_s18, 2 }
  0x27   : > { %s37_s21 = ssub.s32 %s1470_s27, %s1841_s15  ;;  %s1068_s9 = sshll.u32 %s1470_s27, 1 }
  0x28   : > { %s39_s29 = sor.u32 %s38_s17, %s37_s21  ;;  %s248_s10 = sadd.s32 %s1466_s26, %s1068_s9 }
  0x29   : > { %p40_p11 = scmp.eq.s32.totalorder %s39_s29, 0  ;;  %s1069_s12 = sshll.u32 %s248_s10, 6 }
  0x2a   : > { %s243_s13 = scalar_lea.vmem [#allocation2], %s1067_s20  ;;  %s250_s6 = scalar_lea.hbm %s1806_s0, %s1069_s12 }
  0x2b   : > { %s252_s14 = sshll.u32 %s243_s13, 4  ;;  %p1609_p12 = pnand %p1282_p10, %p1591_p7  ;;  %s253_s14 = int_to_ptr.vmem [resolvable:$true] %s252_s14 }
  0x2c   : > { %s1600_s1 = scalar_select %p40_p11, %s1454_s23, %s42_s16  }
  0x2d   : > { %s240_s17 = scalar_lea.sflag [#allocation3], %s239_s18  ;;  %p1378_p13 = pneg %p1609_p12 }
  0x2e   : > { %s1389_s21 = scalar_lea.vmem %s253_s14, 64  ;;  %s1477_s16 = smov [#allocation2]  }
  0x2f   : > { %p1390_p0 = scmp.ne.s32.totalorder %s253_s14, %s1389_s21  ;;  %s1394_s20 = sshll.u32 %s1477_s16, 4  ;;  %s1395_s20 = int_to_ptr.vmem [resolvable:$false] %s1394_s20 }
  0x30   : > { %s1396_s5 = scalar_lea.vmem %s1395_s20, 128  ;;  %p1397_p6 = scmp.lt.s32.totalorder %s253_s14, %s1395_s20 }
  0x31   : > { %p1392_p2 = pnand %p1390_p0, %p1378_p13  ;;  %p1398_p8 = scmp.lt.s32.totalorder %s1396_s5, %s1389_s21 }
  0x33   : > { %p1393_p3 = pneg %p1392_p2  ;;  %p1399_p9 = por %p1398_p8, %p1397_p6 }
  0x35   : > { %p1400_p11 = pnand %p1399_p9, %p1393_p3 }
  0x37   : > { %1403 = shalt.err (!%p1400_p11)
}
  0x38   : > { %1280 = dma.hbm_to_vmem [thread:$0]  (!%p1609_p12), %s250_s6, 64, %s253_s14, %s240_s17  }
  0x39   : > { %261 = sbr.rel (%p1565_p5) target bundleno = 453 (0x1c5), region = 40  ;;  %s263_s11 = sand.u32 (!%p1565_p5), 1, %s1450_s22  }
  0x3a   : > { %s1071_s18 = sshll.u32 (!%p1565_p5), %s263_s11, 2  ;;  %s264_s19 = scalar_lea.sflag (!%p1565_p5), [#allocation3], %s263_s11 }
  0x3b   : > { %s267_s29 = scalar_lea.vmem (!%p1565_p5), [#allocation2], %s1071_s18 }
  0x3e   : > { %1437 = dma.done.wait (%p1561_p4), %s264_s19, 64  }
  0x3f   : > { %1439 = vsyncadd (%p1561_p4), %s264_s19, 4294967232 }
  0x40   : > { %1441 = dma.done.wait (%p1553_p1), [#allocation5], 64  }
  0x41   : > { %1443 = vsyncadd (%p1553_p1), [#allocation5], 4294967232  ;;  %vm423_vm0 = vcmask 1043456   ;;  %v333_v0 = vld [vmem:[%s267_s29] sm:$0xf]  ;;  %vm374_vm1 = vcmask 31744  }
  0x42   : > { %v334_v1 = vld [vmem:[#allocation4] sm:$0xf]  ;;  %v588_v2 = vld [vmem:[%s1809_s3] sm:$0xf]  ;;  %342 = vxpose.xlu0.b32.start.end [1/1] (short) %v333_v0, 128  ;;  %s1073_s30 = sshll.u32 %s1458_s24, 4  ;;  %p314_p1 = scmp.lt.s32.totalorder %s1462_s25, 1 }
  0x43   : > { %1215 = vmatprep.subr.msk.mxu0 %vm423_vm0, %v334_v1  ;;  %1241 = vmatprep.subr.msk.mxu1 %vm423_vm0, %v588_v2  ;;  %p316_p4 = scmp.lt.s32.totalorder %s1073_s30, 31  ;;  %v1669_v19 = vld [vmem:[%s1808_s2] ss:$0 sm:$0xff]  ;;  %s1825_s14 = sld [smem:[#allocation10_spill]]  ;;  %vm808_vm2 = vcmask 60416  }
  0x44   : > { %1216 = vmatpush3.msk.msra.mxu0 %vm423_vm0, %v334_v1  ;;  %1242 = vmatpush3.msk.msra.mxu1 %vm423_vm0, %v588_v2  ;;  %s1843_s25 = smov (!%p314_p1, %s1462_s25), 1  ;;  %s1826_s21 = sld [smem:[#allocation12_spill]] }
  0x45   : > { %s1845_s30 = smov (!%p316_p4, %s1073_s30), 31  ;;  %s1074_s7 = sshll.u32 %s1843_s25, 5 }
  0x46   : > { %s319_s8 = sadd.s32 %s1074_s7, %s1845_s30  ;;  %s1827_s11 = sld [smem:[#allocation11_spill]] }
  0x47   : > { %s1075_s17 = sshll.u32 %s319_s8, 2 }
  0x49   : > { %v1674_v20 = vld [vmem:[%s1825_s14] ss:$0 sm:$0xff] }
  0x4a   : > { %s1681_s16 = scalar_lea.vmem %s1826_s21, %s1075_s17 }
  0x4c   : > { %s1688_s18 = scalar_lea.vmem %s1827_s11, %s1075_s17 }
  0xbe   : > { %v358_v3 = vpop.trf.xlu0 }
  0xbf   : > { %1217 = vmatprep.mubr.msk.f32.mxu0 %vm374_vm1, %v358_v3  ;;  %1243 = vmatprep.mubr.msk.f32.mxu1 %vm374_vm1, %v358_v3 }
  0xc2   : > { %v359_v4 = vpop.trf.xlu0 }
  0xc3   : > { %1218 = vmatmul.mubr.msk.f32.vlgmr.msra.gmra.mxu0 %vm374_vm1, %v359_v4  ;;  %1244 = vmatmul.mubr.msk.f32.vlgmr.msra.gmra.mxu1 %vm374_vm1, %v359_v4 }
  0xc6   : > { %v360_v5 = vpop.trf.xlu0 }
  0xc7   : > { %1220 = vmatprep.mubr.msk.f32.mxu0 %vm374_vm1, %v360_v5  ;;  %1246 = vmatprep.mubr.msk.f32.mxu1 %vm374_vm1, %v360_v5 }
  0xca   : > { %v361_v6 = vpop.trf.xlu0 }
  0xcb   : > { %1221 = vmatmul.mubr.msk.f32.gmra.mxu0 %vm374_vm1, %v361_v6  ;;  %1247 = vmatmul.mubr.msk.f32.gmra.mxu1 %vm374_vm1, %v361_v6 }
  0xce   : > { %v362_v7 = vpop.trf.xlu0 }
  0xcf   : > { %1223 = vmatprep.mubr.msk.f32.mxu0 %vm374_vm1, %v362_v7  ;;  %1249 = vmatprep.mubr.msk.f32.mxu1 %vm374_vm1, %v362_v7 }
  0xd2   : > { %v363_v8 = vpop.trf.xlu0 }
  0xd3   : > { %1224 = vmatmul.mubr.msk.f32.gmra.mxu0 %vm374_vm1, %v363_v8  ;;  %1250 = vmatmul.mubr.msk.f32.gmra.mxu1 %vm374_vm1, %v363_v8 }
  0xd6   : > { %v364_v9 = vpop.trf.xlu0 }
  0xd7   : > { %1226 = vmatprep.mubr.msk.f32.mxu0 %vm374_vm1, %v364_v9  ;;  %1252 = vmatprep.mubr.msk.f32.mxu1 %vm374_vm1, %v364_v9 }
  0xda   : > { %v365_v10 = vpop.trf.xlu0 }
  0xdb   : > { %1227 = vmatmul.mubr.msk.f32.gmra.mxu0 %vm374_vm1, %v365_v10  ;;  %1253 = vmatmul.mubr.msk.f32.gmra.mxu1 %vm374_vm1, %v365_v10 }
  0xde   : > { %v366_v11 = vpop.trf.xlu0 }
  0xdf   : > { %1229 = vmatprep.mubr.msk.f32.mxu0 %vm374_vm1, %v366_v11  ;;  %1255 = vmatprep.mubr.msk.f32.mxu1 %vm374_vm1, %v366_v11 }
  0xe2   : > { %v367_v12 = vpop.trf.xlu0 }
  0xe3   : > { %1230 = vmatmul.mubr.msk.f32.gmra.mxu0 %vm374_vm1, %v367_v12  ;;  %1256 = vmatmul.mubr.msk.f32.gmra.mxu1 %vm374_vm1, %v367_v12 }
  0xe6   : > { %v368_v13 = vpop.trf.xlu0 }
  0xe7   : > { %1232 = vmatprep.mubr.msk.f32.mxu0 %vm374_vm1, %v368_v13  ;;  %1258 = vmatprep.mubr.msk.f32.mxu1 %vm374_vm1, %v368_v13 }
  0xea   : > { %v369_v14 = vpop.trf.xlu0 }
  0xeb   : > { %1233 = vmatmul.mubr.msk.f32.gmra.mxu0 %vm374_vm1, %v369_v14  ;;  %1259 = vmatmul.mubr.msk.f32.gmra.mxu1 %vm374_vm1, %v369_v14 }
  0xee   : > { %v370_v15 = vpop.trf.xlu0 }
  0xef   : > { %1235 = vmatprep.mubr.msk.f32.mxu0 %vm374_vm1, %v370_v15  ;;  %1261 = vmatprep.mubr.msk.f32.mxu1 %vm374_vm1, %v370_v15 }
  0xf2   : > { %v371_v16 = vpop.trf.xlu0 }
  0xf3   : > { %1236 = vmatmul.mubr.msk.f32.gmra.mxu0 %vm374_vm1, %v371_v16  ;;  %1262 = vmatmul.mubr.msk.f32.gmra.mxu1 %vm374_vm1, %v371_v16 }
  0xf6   : > { %v372_v17 = vpop.trf.xlu0 }
  0xf7   : > { %1238 = vmatprep.mubr.msk.f32.mxu0 %vm374_vm1, %v372_v17  ;;  %1264 = vmatprep.mubr.msk.f32.mxu1 %vm374_vm1, %v372_v17 }
  0xfa   : > { %v373_v18 = vpop.trf.xlu0 }
  0xfb   : > { %1239 = vmatmul.mubr.msk.f32.gmra.mxu0 %vm374_vm1, %v373_v18  ;;  %1265 = vmatmul.mubr.msk.f32.gmra.mxu1 %vm374_vm1, %v373_v18 }
 0x183   : > { %v1219_v21 = vpop.f32.mrf.mxu0  ;;  %v1245_v22 = vpop.f32.mrf.mxu1 }
 0x184   : > { %v499_v23 = vadd.f32 %v1219_v21, %v1669_v19  ;;  %v671_v24 = vadd.f32 %v1245_v22, %v1674_v20 }
 0x185   : > { %v493_v25 = vpop.f32.mrf.mxu0  ;;  %v665_v26 = vpop.f32.mrf.mxu1 }
 0x186   : > { %v573_v27 = vmax.f32 %v499_v23, 0.0  ;;  %v1166_v28 = vpack.c.bf16 %v671_v24, %v671_v24  ;;  %v494_v29 = vadd.f32 %v1669_v19, %v493_v25  ;;  %v666_v30 = vadd.f32 %v1674_v20, %v665_v26 }
 0x188   : > { %v1150_v31 = vpack.c.bf16 %v573_v27, %v573_v27  ;;  %890 = vst.msk [vmem:[%s1681_s16 + $0x4] sm:$0xf] %vm808_vm2, %v1166_v28  ;;  %v572_v32 = vmax.f32 %v494_v29, 0.0  ;;  %v1165_v33 = vpack.c.bf16 %v666_v30, %v666_v30 }
 0x18a   : > { %810 = vst.msk [vmem:[%s1688_s18 + $0x4] sm:$0xf] %vm808_vm2, %v1150_v31  ;;  %v1149_v34 = vpack.c.bf16 %v572_v32, %v572_v32  ;;  %889 = vst.msk [vmem:[%s1681_s16] sm:$0xf] %vm808_vm2, %v1165_v33 }
 0x18b   : > { %v1222_v35 = vpop.f32.mrf.mxu0  ;;  %v1248_v36 = vpop.f32.mrf.mxu1 }
 0x18c   : > { %809 = vst.msk [vmem:[%s1688_s18] sm:$0xf] %vm808_vm2, %v1149_v34  ;;  %v509_v37 = vadd.f32 %v1222_v35, %v1669_v19  ;;  %v681_v38 = vadd.f32 %v1248_v36, %v1674_v20 }
 0x18d   : > { %v503_v39 = vpop.f32.mrf.mxu0  ;;  %v675_v40 = vpop.f32.mrf.mxu1 }
 0x18e   : > { %v575_v41 = vmax.f32 %v509_v37, 0.0  ;;  %v1168_v42 = vpack.c.bf16 %v681_v38, %v681_v38  ;;  %v504_v43 = vadd.f32 %v1669_v19, %v503_v39  ;;  %v676_v44 = vadd.f32 %v1674_v20, %v675_v40 }
 0x190   : > { %v1152_v45 = vpack.c.bf16 %v575_v41, %v575_v41  ;;  %892 = vst.msk [vmem:[%s1681_s16 + $0xc] sm:$0xf] %vm808_vm2, %v1168_v42  ;;  %v574_v46 = vmax.f32 %v504_v43, 0.0  ;;  %v1167_v47 = vpack.c.bf16 %v676_v44, %v676_v44 }
 0x192   : > { %812 = vst.msk [vmem:[%s1688_s18 + $0xc] sm:$0xf] %vm808_vm2, %v1152_v45  ;;  %v1151_v48 = vpack.c.bf16 %v574_v46, %v574_v46  ;;  %891 = vst.msk [vmem:[%s1681_s16 + $0x8] sm:$0xf] %vm808_vm2, %v1167_v47 }
 0x193   : > { %v1225_v49 = vpop.f32.mrf.mxu0  ;;  %v1251_v50 = vpop.f32.mrf.mxu1 }
 0x194   : > { %811 = vst.msk [vmem:[%s1688_s18 + $0x8] sm:$0xf] %vm808_vm2, %v1151_v48  ;;  %v519_v51 = vadd.f32 %v1225_v49, %v1669_v19  ;;  %v691_v52 = vadd.f32 %v1251_v50, %v1674_v20 }
 0x195   : > { %v513_v53 = vpop.f32.mrf.mxu0  ;;  %v685_v54 = vpop.f32.mrf.mxu1 }
 0x196   : > { %v577_v55 = vmax.f32 %v519_v51, 0.0  ;;  %v1170_v56 = vpack.c.bf16 %v691_v52, %v691_v52  ;;  %v514_v57 = vadd.f32 %v1669_v19, %v513_v53  ;;  %v686_v58 = vadd.f32 %v1674_v20, %v685_v54 }
 0x198   : > { %v1154_v59 = vpack.c.bf16 %v577_v55, %v577_v55  ;;  %894 = vst.msk [vmem:[%s1681_s16 + $0x14] sm:$0xf] %vm808_vm2, %v1170_v56  ;;  %v576_v60 = vmax.f32 %v514_v57, 0.0  ;;  %v1169_v61 = vpack.c.bf16 %v686_v58, %v686_v58 }
 0x19a   : > { %814 = vst.msk [vmem:[%s1688_s18 + $0x14] sm:$0xf] %vm808_vm2, %v1154_v59  ;;  %v1153_v62 = vpack.c.bf16 %v576_v60, %v576_v60  ;;  %893 = vst.msk [vmem:[%s1681_s16 + $0x10] sm:$0xf] %vm808_vm2, %v1169_v61 }
 0x19b   : > { %v1228_v63 = vpop.f32.mrf.mxu0  ;;  %v1254_v0 = vpop.f32.mrf.mxu1 }
 0x19c   : > { %813 = vst.msk [vmem:[%s1688_s18 + $0x10] sm:$0xf] %vm808_vm2, %v1153_v62  ;;  %v529_v1 = vadd.f32 %v1228_v63, %v1669_v19  ;;  %v701_v2 = vadd.f32 %v1254_v0, %v1674_v20 }
 0x19d   : > { %v523_v3 = vpop.f32.mrf.mxu0  ;;  %v695_v4 = vpop.f32.mrf.mxu1 }
 0x19e   : > { %v579_v5 = vmax.f32 %v529_v1, 0.0  ;;  %v1172_v6 = vpack.c.bf16 %v701_v2, %v701_v2  ;;  %v524_v7 = vadd.f32 %v1669_v19, %v523_v3  ;;  %v696_v8 = vadd.f32 %v1674_v20, %v695_v4 }
 0x1a0   : > { %v1156_v9 = vpack.c.bf16 %v579_v5, %v579_v5  ;;  %896 = vst.msk [vmem:[%s1681_s16 + $0x1c] sm:$0xf] %vm808_vm2, %v1172_v6  ;;  %v578_v10 = vmax.f32 %v524_v7, 0.0  ;;  %v1171_v11 = vpack.c.bf16 %v696_v8, %v696_v8 }
 0x1a2   : > { %816 = vst.msk [vmem:[%s1688_s18 + $0x1c] sm:$0xf] %vm808_vm2, %v1156_v9  ;;  %v1155_v12 = vpack.c.bf16 %v578_v10, %v578_v10  ;;  %895 = vst.msk [vmem:[%s1681_s16 + $0x18] sm:$0xf] %vm808_vm2, %v1171_v11 }
 0x1a3   : > { %v1231_v13 = vpop.f32.mrf.mxu0  ;;  %v1257_v14 = vpop.f32.mrf.mxu1 }
 0x1a4   : > { %815 = vst.msk [vmem:[%s1688_s18 + $0x18] sm:$0xf] %vm808_vm2, %v1155_v12  ;;  %v539_v15 = vadd.f32 %v1231_v13, %v1669_v19  ;;  %v711_v16 = vadd.f32 %v1257_v14, %v1674_v20 }
 0x1a5   : > { %v533_v17 = vpop.f32.mrf.mxu0  ;;  %v705_v18 = vpop.f32.mrf.mxu1 }
 0x1a6   : > { %v581_v21 = vmax.f32 %v539_v15, 0.0  ;;  %v1174_v22 = vpack.c.bf16 %v711_v16, %v711_v16  ;;  %v534_v23 = vadd.f32 %v1669_v19, %v533_v17  ;;  %v706_v24 = vadd.f32 %v1674_v20, %v705_v18 }
 0x1a8   : > { %v1158_v25 = vpack.c.bf16 %v581_v21, %v581_v21  ;;  %898 = vst.msk [vmem:[%s1681_s16 + $0x24] sm:$0xf] %vm808_vm2, %v1174_v22  ;;  %v580_v26 = vmax.f32 %v534_v23, 0.0  ;;  %v1173_v27 = vpack.c.bf16 %v706_v24, %v706_v24 }
 0x1aa   : > { %818 = vst.msk [vmem:[%s1688_s18 + $0x24] sm:$0xf] %vm808_vm2, %v1158_v25  ;;  %v1157_v28 = vpack.c.bf16 %v580_v26, %v580_v26  ;;  %897 = vst.msk [vmem:[%s1681_s16 + $0x20] sm:$0xf] %vm808_vm2, %v1173_v27 }
 0x1ab   : > { %v1234_v29 = vpop.f32.mrf.mxu0  ;;  %v1260_v30 = vpop.f32.mrf.mxu1 }
 0x1ac   : > { %817 = vst.msk [vmem:[%s1688_s18 + $0x20] sm:$0xf] %vm808_vm2, %v1157_v28  ;;  %v549_v31 = vadd.f32 %v1234_v29, %v1669_v19  ;;  %v721_v32 = vadd.f32 %v1260_v30, %v1674_v20 }
 0x1ad   : > { %v543_v33 = vpop.f32.mrf.mxu0  ;;  %v715_v34 = vpop.f32.mrf.mxu1 }
 0x1ae   : > { %v583_v35 = vmax.f32 %v549_v31, 0.0  ;;  %v1176_v36 = vpack.c.bf16 %v721_v32, %v721_v32  ;;  %v544_v37 = vadd.f32 %v1669_v19, %v543_v33  ;;  %v716_v38 = vadd.f32 %v1674_v20, %v715_v34 }
 0x1b0   : > { %v1160_v39 = vpack.c.bf16 %v583_v35, %v583_v35  ;;  %900 = vst.msk [vmem:[%s1681_s16 + $0x2c] sm:$0xf] %vm808_vm2, %v1176_v36  ;;  %v582_v40 = vmax.f32 %v544_v37, 0.0  ;;  %v1175_v41 = vpack.c.bf16 %v716_v38, %v716_v38 }
 0x1b2   : > { %820 = vst.msk [vmem:[%s1688_s18 + $0x2c] sm:$0xf] %vm808_vm2, %v1160_v39  ;;  %v1159_v42 = vpack.c.bf16 %v582_v40, %v582_v40  ;;  %899 = vst.msk [vmem:[%s1681_s16 + $0x28] sm:$0xf] %vm808_vm2, %v1175_v41 }
 0x1b3   : > { %v1237_v43 = vpop.f32.mrf.mxu0  ;;  %v1263_v44 = vpop.f32.mrf.mxu1 }
 0x1b4   : > { %819 = vst.msk [vmem:[%s1688_s18 + $0x28] sm:$0xf] %vm808_vm2, %v1159_v42  ;;  %v559_v45 = vadd.f32 %v1237_v43, %v1669_v19  ;;  %v731_v46 = vadd.f32 %v1263_v44, %v1674_v20 }
 0x1b5   : > { %v553_v47 = vpop.f32.mrf.mxu0  ;;  %v725_v48 = vpop.f32.mrf.mxu1 }
 0x1b6   : > { %v585_v49 = vmax.f32 %v559_v45, 0.0  ;;  %v1178_v50 = vpack.c.bf16 %v731_v46, %v731_v46  ;;  %v554_v51 = vadd.f32 %v1669_v19, %v553_v47  ;;  %v726_v52 = vadd.f32 %v1674_v20, %v725_v48 }
 0x1b8   : > { %v1162_v53 = vpack.c.bf16 %v585_v49, %v585_v49  ;;  %902 = vst.msk [vmem:[%s1681_s16 + $0x34] sm:$0xf] %vm808_vm2, %v1178_v50  ;;  %v584_v54 = vmax.f32 %v554_v51, 0.0  ;;  %v1177_v55 = vpack.c.bf16 %v726_v52, %v726_v52 }
 0x1ba   : > { %822 = vst.msk [vmem:[%s1688_s18 + $0x34] sm:$0xf] %vm808_vm2, %v1162_v53  ;;  %v1161_v56 = vpack.c.bf16 %v584_v54, %v584_v54  ;;  %901 = vst.msk [vmem:[%s1681_s16 + $0x30] sm:$0xf] %vm808_vm2, %v1177_v55 }
 0x1bb   : > { %v1240_v57 = vpop.f32.mrf.mxu0  ;;  %v1266_v58 = vpop.f32.mrf.mxu1 }
 0x1bc   : > { %821 = vst.msk [vmem:[%s1688_s18 + $0x30] sm:$0xf] %vm808_vm2, %v1161_v56  ;;  %v569_v59 = vadd.f32 %v1240_v57, %v1669_v19  ;;  %v741_v60 = vadd.f32 %v1266_v58, %v1674_v20 }
 0x1bd   : > { %v563_v61 = vpop.f32.mrf.mxu0  ;;  %v735_v62 = vpop.f32.mrf.mxu1 }
 0x1be   : > { %v587_v63 = vmax.f32 %v569_v59, 0.0  ;;  %v1180_v0 = vpack.c.bf16 %v741_v60, %v741_v60  ;;  %v564_v1 = vadd.f32 %v1669_v19, %v563_v61  ;;  %v736_v2 = vadd.f32 %v1674_v20, %v735_v62 }
 0x1c0   : > { %v1164_v3 = vpack.c.bf16 %v587_v63, %v587_v63  ;;  %904 = vst.msk [vmem:[%s1681_s16 + $0x3c] sm:$0xf] %vm808_vm2, %v1180_v0  ;;  %v586_v4 = vmax.f32 %v564_v1, 0.0  ;;  %v1179_v5 = vpack.c.bf16 %v736_v2, %v736_v2 }
 0x1c2   : > { %824 = vst.msk [vmem:[%s1688_s18 + $0x3c] sm:$0xf] %vm808_vm2, %v1164_v3  ;;  %v1163_v6 = vpack.c.bf16 %v586_v4, %v586_v4  ;;  %903 = vst.msk [vmem:[%s1681_s16 + $0x38] sm:$0xf] %vm808_vm2, %v1179_v5 }
 0x1c4   : > { %823 = vst.msk [vmem:[%s1688_s18 + $0x38] sm:$0xf] %vm808_vm2, %v1163_v6 }
 0x1c5 PF: > { %s21_s28 = sadd.s32 1, %s1474_s28   ;;  %s1828_s19 = sld [smem:[#allocation8_spill]] }
 0x1c6   : > { %p18_p5 = scmp.ge.s32.totalorder %s21_s28, 6   ;;  %s1829_s21 = smov %s1450_s22 }
 0x1c7   : > { %s1830_s22 = smov %s1454_s23  ;;  %s1831_s23 = smov %s1600_s1 }
 0x1c8   : > { %s1832_s24 = smov %s1466_s26  ;;  %s1833_s25 = smov %s1470_s27 }
 0x1c9   : > { %s1835_s27 = smov %s1841_s15  ;;  %20 = sbr.rel (!%p18_p5) target bundleno = 11 (0xb), region = 96 }
 0x1cb   : > { %s1834_s26 = smov %s1828_s19 }
 0x1ce   :  { %960 = vsyncpa [#allocation3], 1 }
 0x1cf   :  { %962 = vsyncpa [#allocation3 + $0x1], 1 }
 0x1d0   :  { %963 = vsyncpa [#allocation5], 1 }

</bundles_post_ra>
